<compile_context>
chip_gen: v7x
topology: tpu7x:2x2x1
jax: 0.10.0
libtpu: 0.0.40
codegen_flags: <defaults>
</compile_context>

<pallas_src>
import jax
import jax.numpy as jnp
from jax.experimental import pallas as pl
from jax.experimental.pallas import tpu as pltpu


def _round_up(x, m):
    return ((x + m - 1) // m) * m


def _combined_kernel(x_ref, w1_ref, b1_ref, w2_ref, b2_ref, out_ref):
    # In-kernel bf16 cast of the activations (no separate XLA pad/cast pass).
    x = x_ref[...].astype(jnp.bfloat16)
    # net1: beta = x @ W1 + b1   (W1 pre-transposed to [IN, HIDp]; plain MXU dot)
    beta = jnp.dot(x, w1_ref[...], preferred_element_type=jnp.float32) + b1_ref[...]
    # net2: gamma = beta @ W2 + b2   (W2 pre-transposed to [HIDp, OUT])
    gamma = jnp.dot(beta.astype(jnp.bfloat16), w2_ref[...],
                    preferred_element_type=jnp.float32) + b2_ref[...]
    # TODO(synk): for TB >= 256, process the batch tile in 64-128-row sub-chunks
    # (unrolled fori_loop) to keep beta in vregs instead of spilling to VMEM.
    out_ref[...] = gamma.astype(out_ref.dtype)


def prepare_params(w1, b1, w2, b2):
    """One-time parameter prep (do NOT redo per forward call).

    - Transposes weights once to [in_features, out_features] layout (plain MXU
      dots in the kernel, no per-step weight transpose).
    - Pads only the internal HID axis to a multiple of 128 (lane-dense; exact,
      since padded columns/rows are zero).  IN / OUT keep their true sizes, so
      the hot path needs neither an input pad nor an output un-pad.
    - Weights -> bf16 for the MXU; biases stay fp32 for the epilogue.
    """
    HID, IN = w1.shape
    OUT = w2.shape[0]
    # NOTE: for large HID on v6e/v7x, pad to 256 instead (256-wide MXU); 128 fits v5e.
    HIDp = _round_up(HID, 128)

    w1t = jnp.zeros((IN, HIDp), jnp.bfloat16).at[:, :HID].set(
        jnp.asarray(w1).T.astype(jnp.bfloat16))
    w2t = jnp.zeros((HIDp, OUT), jnp.bfloat16).at[:HID, :].set(
        jnp.asarray(w2).T.astype(jnp.bfloat16))
    b1p = jnp.zeros((1, HIDp), jnp.float32).at[0, :HID].set(
        jnp.asarray(b1, jnp.float32))
    b2p = jnp.asarray(b2, jnp.float32).reshape(1, OUT)
    return {"w1t": w1t, "b1": b1p, "w2t": w2t, "b2": b2p, "dims": (IN, HID, OUT)}


def combined_forward(x, params, out_dtype=jnp.float32):
    """x: [B, IN] float. Returns [B, OUT] in out_dtype (fp32 default; pass
    jnp.bfloat16 to halve output store bytes, most useful on v5e)."""
    IN, HID, OUT = params["dims"]
    w1t, b1p, w2t, b2p = params["w1t"], params["b1"], params["w2t"], params["b2"]
    HIDp = w1t.shape[1]
    B = x.shape[0]

    # Batch tile: sublane-aligned, capped at 512 (amortizes the ~0.35us/step
    # overhead and stays well inside VMEM on v5e/v6e/v7x at these weight sizes);
    # shrink it if padding B up to a multiple of TB would waste > ~12.5% rows.
    TB = min(512, _round_up(B, 8))
    while TB > 8 and (_round_up(B, TB) - B) * 8 > _round_up(B, TB):
        TB = _round_up(TB // 2, 8)
    Bp = _round_up(B, TB)
    xb = x if Bp == B else jnp.pad(x, ((0, Bp - B), (0, 0)))

    # TODO(synk): if the real net1/net2 are large (bf16 weights >> ~16 MiB), add
    # a contraction grid axis with a pl.when-managed fp32 VMEM accumulator and
    # set vmem_limit_bytes (v7x has only 64 MiB VMEM), plus a parallel OUT-tile
    # axis so v7x's 2nd TensorCore gets work when B <= TB.
    out = pl.pallas_call(
        _combined_kernel,
        out_shape=jax.ShapeDtypeStruct((Bp, OUT), out_dtype),
        grid=(Bp // TB,),
        in_specs=[
            pl.BlockSpec((TB, IN), lambda i: (i, 0)),           # x: tiled over batch
            # Grid-invariant weights/biases: constant index_map keeps them
            # VMEM-resident; Buffered(1) drops the pointless second buffer.
            pl.BlockSpec((IN, HIDp), lambda i: (0, 0), pipeline_mode=pl.Buffered(1)),
            pl.BlockSpec((1, HIDp), lambda i: (0, 0), pipeline_mode=pl.Buffered(1)),
            pl.BlockSpec((HIDp, OUT), lambda i: (0, 0), pipeline_mode=pl.Buffered(1)),
            pl.BlockSpec((1, OUT), lambda i: (0, 0), pipeline_mode=pl.Buffered(1)),
        ],
        out_specs=pl.BlockSpec((TB, OUT), lambda i: (i, 0)),
        compiler_params=pltpu.CompilerParams(
            dimension_semantics=("parallel",),                  # batch across TCs (v7x)
        ),
    )(xb, w1t, b1p, w2t, b2p)

    return out if Bp == B else out[:B]


if __name__ == "__main__":
    B, IN, HID, OUT = 8, 32, 32, 16

    key = jax.random.PRNGKey(0)
    kx, kw1, kb1, kw2, kb2 = jax.random.split(key, 5)

    x = jax.random.normal(kx, (B, IN), dtype=jnp.float32)
    # TODO(synk): net1/net2 assumed to be nn.Linear(IN,HID)/nn.Linear(HID,OUT);
    # confirm against the real sub-networks passed in grpo_basic_test.py.
    w1 = jax.random.normal(kw1, (HID, IN), dtype=jnp.float32) * (1.0 / jnp.sqrt(IN))
    b1 = jax.random.normal(kb1, (HID,), dtype=jnp.float32) * 0.1
    w2 = jax.random.normal(kw2, (OUT, HID), dtype=jnp.float32) * (1.0 / jnp.sqrt(HID))
    b2 = jax.random.normal(kb2, (OUT,), dtype=jnp.float32) * 0.1

    params = prepare_params(w1, b1, w2, b2)   # one-time prep (transpose + pad + bf16)
    out = combined_forward(x, params)
    out = jax.block_until_ready(out)

    # Pure-JAX fp32 reference of CombinedModel.forward.
    beta_ref = x @ w1.T + b1
    gamma_ref = beta_ref @ w2.T + b2
    assert out.shape == (B, OUT)
    # bf16 weights/activations with fp32 accumulation -> tolerance covers bf16
    # rounding (keep fp32 weights instead if the test needs exact parity).
    assert jnp.allclose(out, gamma_ref, atol=5e-2, rtol=5e-2), (
        float(jnp.max(jnp.abs(out - gamma_ref))))

    print("KERNEL_OK")
</pallas_src>

<mosaic_0001>
module attributes {stable_mosaic.version = 11 : i64} {
  func.func @_combined_kernel(%arg0: i32, %arg1: memref<8x32xf32, #tpu.memory_space<vmem>>, %arg2: memref<32x128xbf16, #tpu.memory_space<vmem>>, %arg3: memref<1x128xf32, #tpu.memory_space<vmem>>, %arg4: memref<128x16xbf16, #tpu.memory_space<vmem>>, %arg5: memref<1x16xf32, #tpu.memory_space<vmem>>, %arg6: memref<8x16xf32, #tpu.memory_space<vmem>>) attributes {dimension_semantics = [#tpu.dimension_semantics<parallel>], iteration_bounds = array<i64: 1>, scalar_prefetch = 0 : i64, scratch_operands = 0 : i64, tpu.core_type = #tpu.core_type<tc>, window_params = [{transform_indices = @transform_0, window_bounds = array<i64: 8, 32>}, {pipeline_mode = #tpu.pipeline_mode<synchronous>, transform_indices = @transform_1, window_bounds = array<i64: 32, 128>}, {pipeline_mode = #tpu.pipeline_mode<synchronous>, transform_indices = @transform_2, window_bounds = array<i64: 1, 128>}, {pipeline_mode = #tpu.pipeline_mode<synchronous>, transform_indices = @transform_3, window_bounds = array<i64: 128, 16>}, {pipeline_mode = #tpu.pipeline_mode<synchronous>, transform_indices = @transform_4, window_bounds = array<i64: 1, 16>}, {transform_indices = @transform_5, window_bounds = array<i64: 8, 16>}]} {
    %c0 = arith.constant 0 : index
    %c0_0 = arith.constant 0 : index
    %0 = vector.load %arg1[%c0, %c0_0] : memref<8x32xf32, #tpu.memory_space<vmem>>, vector<8x32xf32>
    %1 = arith.truncf %0 : vector<8x32xf32> to vector<8x32xbf16>
    %c0_1 = arith.constant 0 : index
    %c0_2 = arith.constant 0 : index
    %2 = vector.load %arg2[%c0_1, %c0_2] : memref<32x128xbf16, #tpu.memory_space<vmem>>, vector<32x128xbf16>
    %cst = arith.constant dense<0.000000e+00> : vector<8x128xf32>
    %3 = tpu.matmul %1, %2, %cst {dimension_numbers = #tpu.dot_dimension_numbers<[1], [0], [0], [1], [0, 0, 1, 1], [], []>} : vector<8x32xbf16>, vector<32x128xbf16>, vector<8x128xf32> -> vector<8x128xf32>
    %c0_3 = arith.constant 0 : index
    %c0_4 = arith.constant 0 : index
    %4 = vector.load %arg3[%c0_3, %c0_4] : memref<1x128xf32, #tpu.memory_space<vmem>>, vector<1x128xf32>
    %5 = vector.broadcast %4 : vector<1x128xf32> to vector<8x128xf32>
    %6 = arith.addf %3, %5 : vector<8x128xf32>
    %7 = arith.truncf %6 : vector<8x128xf32> to vector<8x128xbf16>
    %c0_5 = arith.constant 0 : index
    %c0_6 = arith.constant 0 : index
    %8 = vector.load %arg4[%c0_5, %c0_6] : memref<128x16xbf16, #tpu.memory_space<vmem>>, vector<128x16xbf16>
    %cst_7 = arith.constant dense<0.000000e+00> : vector<8x16xf32>
    %9 = tpu.matmul %7, %8, %cst_7 {dimension_numbers = #tpu.dot_dimension_numbers<[1], [0], [0], [1], [0, 0, 1, 1], [], []>} : vector<8x128xbf16>, vector<128x16xbf16>, vector<8x16xf32> -> vector<8x16xf32>
    %c0_8 = arith.constant 0 : index
    %c0_9 = arith.constant 0 : index
    %10 = vector.load %arg5[%c0_8, %c0_9] : memref<1x16xf32, #tpu.memory_space<vmem>>, vector<1x16xf32>
    %11 = vector.broadcast %10 : vector<1x16xf32> to vector<8x16xf32>
    %12 = arith.addf %9, %11 : vector<8x16xf32>
    %c0_10 = arith.constant 0 : index
    %c0_11 = arith.constant 0 : index
    %13 = vector.load %arg6[%c0_10, %c0_11] : memref<8x16xf32, #tpu.memory_space<vmem>>, vector<8x16xf32>
    tpu.vector_store %arg6[%c0_10, %c0_11], %12 {strides = array<i32>} : memref<8x16xf32, #tpu.memory_space<vmem>>, vector<8x16xf32>,
    return
  }
  func.func @transform_0(%arg0: i32) -> (i32, i32) {
    %c0_i32 = arith.constant 0 : i32
    %c0_i32_0 = arith.constant 0 : i32
    return %arg0, %c0_i32 : i32, i32
  }
  func.func @transform_1(%arg0: i32) -> (i32, i32) {
    %c0_i32 = arith.constant 0 : i32
    %c0_i32_0 = arith.constant 0 : i32
    %c0_i32_1 = arith.constant 0 : i32
    return %c0_i32, %c0_i32_0 : i32, i32
  }
  func.func @transform_2(%arg0: i32) -> (i32, i32) {
    %c0_i32 = arith.constant 0 : i32
    %c0_i32_0 = arith.constant 0 : i32
    %c0_i32_1 = arith.constant 0 : i32
    return %c0_i32, %c0_i32_0 : i32, i32
  }
  func.func @transform_3(%arg0: i32) -> (i32, i32) {
    %c0_i32 = arith.constant 0 : i32
    %c0_i32_0 = arith.constant 0 : i32
    %c0_i32_1 = arith.constant 0 : i32
    return %c0_i32, %c0_i32_0 : i32, i32
  }
  func.func @transform_4(%arg0: i32) -> (i32, i32) {
    %c0_i32 = arith.constant 0 : i32
    %c0_i32_0 = arith.constant 0 : i32
    %c0_i32_1 = arith.constant 0 : i32
    return %c0_i32, %c0_i32_0 : i32, i32
  }
  func.func @transform_5(%arg0: i32) -> (i32, i32) {
    %c0_i32 = arith.constant 0 : i32
    %c0_i32_0 = arith.constant 0 : i32
    return %arg0, %c0_i32 : i32, i32
  }
}

</mosaic_0001>

<bundles_post_ra>
// kernel: tpu_custom_call.1
= control target key start
LH: loop header
LB: loop body
LE: loop exit
PB: predicated region body
PF: predicated region fallthrough
CT: control target
= control target key end

     0   :  { %v309_v1 = vmov 0.0   ;;  %vm310_vm0 = vmmov 0   ;;  %vm47_vm1 = vcmask 261120   ;;  %s393_s0 = inlined_call_operand.vmem [shape: f32[8,32], index: 0, kind: input, shape index: {}]   ;;  %s394_s1 = inlined_call_operand.vmem [shape: bf16[32,128], index: 1, kind: input, shape index: {}]   ;;  %s395_s2 = inlined_call_operand.vmem [shape: f32[1,128], index: 2, kind: input, shape index: {}]   ;;  %s396_s3 = inlined_call_operand.vmem [shape: bf16[128,16], index: 3, kind: input, shape index: {}]   ;;  %s397_s4 = inlined_call_operand.vmem [shape: f32[1,16], index: 4, kind: input, shape index: {}]   ;;  %s398_s5 = inlined_call_operand.hbm [shape: f32[8,16], index: 5, kind: output, shape index: {}]  }
   0x1   :  { %v275_v0 = vld [vmem:[%s394_s1] sm:$0xff]   ;;  %244 = vmatprep.subr.bf16.mxu0 %v309_v1  ;;  %v276_v2 = vld [vmem:[%s394_s1 + $0x8] sm:$0xff]   ;;  %252 = vmatprep.subr.bf16.mxu1 %v309_v1  ;;  %v279_v7 = vld [vmem:[%s396_s3 + $0x10] sm:$0xff]  }
   0x2   :  { %245 = vmatpush3.bf16.msra.mxu0 %v275_v0  ;;  %248 = vmatprep.mubr.msk.bf16.mxu0 %vm310_vm0, %v309_v1  ;;  %v22_v3 = vld [vmem:[%s393_s0] sm:$0xff]  ;;  %v278_v6 = vld [vmem:[%s396_s3 + $0x8] sm:$0xff]  }
   0x3   :  { %246 = vmatprep.subr.bf16.mxu0 %v309_v1  ;;  %v277_v4 = vld [vmem:[%s396_s3] sm:$0xff]   ;;  %268 = vmatprep.mubr.msk.bf16.mxu1 %vm310_vm0, %v309_v1  ;;  %v23_v5 = vpack.c.bf16 %v22_v3, %v22_v3 }
   0x4   :  { %253 = vmatpush3.bf16.msra.mxu1 %v277_v4 }
   0x5   :  { %254 = vmatprep.subr.bf16.mxu1 %v309_v1 }
   0x6   :  { %247 = vmatpush3.bf16.msra.mxu0 %v276_v2 }
   0x8   :  { %255 = vmatpush3.bf16.msra.mxu1 %v278_v6 }
   0x9   :  { %249 = vmatmul.mubr.msk.bf16.vlgmr.msra.gmra.mrb[0].mxu0 %vm47_vm1, %v23_v5  ;;  %256 = vmatprep.subr.bf16.mxu1 %v309_v1 }
   0xa   :  { %10 = vsyncpa [#allocation3], 0  ;;  %v280_v8 = vld [vmem:[%s396_s3 + $0x18] sm:$0xff]   ;;  %v281_v9 = vld [vmem:[%s396_s3 + $0x20] sm:$0xff]   ;;  %s311_s17 = smov [#allocation2]   ;;  %vm203_vm2 = vcmask 130048  }
   0xb   :  { %v282_v10 = vld [vmem:[%s396_s3 + $0x28] sm:$0xff]   ;;  %v283_v11 = vld [vmem:[%s396_s3 + $0x30] sm:$0xff]   ;;  %v284_v12 = vld [vmem:[%s396_s3 + $0x38] sm:$0xff]   ;;  %s211_s18 = sshll.u32 %s311_s17, 4  ;;  %s212_s18 = int_to_ptr.vmem [resolvable:$true] %s211_s18 }
   0xc   :  { %257 = vmatpush3.bf16.msra.mxu1 %v279_v7  ;;  %v219_v13 = vld [vmem:[%s395_s2] ss:$0 sm:$0xff]  ;;  %s285_s2 = scalar_lea.vmem %s212_s18, 128  ;;  %p290_p1 = scmp.lt.s32.totalorder %s212_s18, %s212_s18 }
   0xd   :  { %258 = vmatprep.subr.bf16.mxu1 %v309_v1  ;;  %v223_v20 = vld [vmem:[%s397_s4] ss:$0 sm:$0xff]  ;;  %p286_p0 = scmp.ne.s32.totalorder %s212_s18, %s285_s2  ;;  %p291_p2 = scmp.lt.s32.totalorder %s285_s2, %s285_s2 }
   0xf   :  { %p292_p3 = por %p291_p2, %p290_p1 }
  0x10   :  { %259 = vmatpush3.bf16.msra.mxu1 %v280_v8 }
  0x11   :  { %260 = vmatprep.subr.bf16.mxu1 %v309_v1  ;;  %p293_p4 = pnand %p292_p3, %p286_p0 }
  0x14   :  { %261 = vmatpush3.bf16.msra.mxu1 %v281_v9 }
  0x15   :  { %262 = vmatprep.subr.bf16.mxu1 %v309_v1 }
  0x18   :  { %263 = vmatpush3.bf16.msra.mxu1 %v282_v10 }
  0x19   :  { %264 = vmatprep.subr.bf16.mxu1 %v309_v1 }
  0x1c   :  { %265 = vmatpush3.bf16.msra.mxu1 %v283_v11 }
  0x1d   :  { %266 = vmatprep.subr.bf16.mxu1 %v309_v1 }
  0x20   :  { %267 = vmatpush3.bf16.msra.mxu1 %v284_v12 }
  0xdc   :  { %v85_v14 = vpop.f32.mrb[0].mxu0 }
  0xdd   :  { %v86_v15 = vadd.f32 %v219_v13, %v85_v14  ;;  %v250_v16 = vpop.f32.mrb[1].mxu0 }
  0xde   :  { %v88_v17 = vpop.f32.mrb[2].mxu0 }
  0xdf   :  { %v91_v18 = vpack.c.bf16 %v86_v15, %v86_v15  ;;  %v251_v19 = vpop.f32.mrb[3].mxu0 }
  0xe1   :  { %269 = vmatmul.mubr.bf16.vlgmr.msra.gmra.mrb[0].mxu1 %v91_v18 }
 0x1b4   :  { %v197_v21 = vpop.f32.mrb[0].mxu1 }
 0x1b5   :  { %v198_v22 = vadd.f32 %v223_v20, %v197_v21  ;;  %v270_v23 = vpop.f32.mrb[1].mxu1 }
 0x1b6   :  { %v200_v24 = vpop.f32.mrb[2].mxu1 }
 0x1b7   :  { %v271_v25 = vpop.f32.mrb[3].mxu1  ;;  %204 = vst.msk [vmem:[#allocation2] sm:$0xff] %vm203_vm2, %v198_v22 }
 0x1b8   :  { %296 = shalt.err (!%p293_p4)
}
 0x1b9   :  { %s297_s4 = scalar_lea.hbm %s398_s5, 128 }
 0x1ba   :  { %p298_p5 = scmp.ne.s32.totalorder %s398_s5, %s297_s4  ;;  %p301_p6 = scmp.lt.u32.totalorder %s297_s4, %s398_s5 }
 0x1bc   :  { %p303_p7 = pnand %p301_p6, %p298_p5 }
 0x1be   :  { %306 = shalt.err (!%p303_p7)
}
 0x1bf   :  { %214 = dma.vmem_to_hbm [thread:$0]  %s212_s18, 128, %s398_s5, [#allocation3]  }
 0x1c0   :  { %307 = dma.done.wait [#allocation3], 128  }
 0x1c1   :  { %308 = vsyncadd [#allocation3], 4294967168 }
 0x1c2   :  { %218 = vsyncpa [#allocation3], 1 }

</bundles_post_ra>
